<compile_context>
chip_gen: v5e
topology: v5e:2x2
jax: 0.10.0
libtpu: 0.0.40
codegen_flags: <defaults>
</compile_context>

<pallas_src>
import math

import jax
import jax.numpy as jnp
import numpy as np
from jax.experimental import pallas as pl
from jax.experimental.pallas import tpu as pltpu


def _attention_kernel(hid_ref, enc_ref, wth_ref, wte_ref, b_ref, v_ref, out_ref):
    """One grid step = TB batch elements.

    hid_ref : (TB, H)     decoder hidden rows for this batch block
    enc_ref : (TB, T, H)  encoder outputs (batch-major inside the kernel)
    wth_ref : (H, H)      hidden half of attn weight, pre-transposed (W[:, :H].T)
    wte_ref : (H, H)      encoder half of attn weight, pre-transposed (W[:, H:].T)
    b_ref   : (1, H)      attn bias
    v_ref   : (1, H)      scoring vector v
    out_ref : (TB, T)     softmax attention weights (lane-dense along T)
    """
    TB, T, H = enc_ref.shape

    wte = wte_ref[...]
    v = v_ref[...]

    # Per-batch bias: hidden @ W[:, :H].T + b  -> (TB, H).
    # Replaces the hidden-repeat + concat half of the original Linear.
    hid_bias = jnp.dot(hid_ref[...], wth_ref[...],
                       preferred_element_type=jnp.float32) + b_ref[...]

    enc = enc_ref[...]                                        # (TB, T, H)
    if T % 8 == 0:
        # Single MXU matmul over all TB*T rows (layout-preserving flatten).
        e = jnp.dot(enc.reshape(TB * T, H), wte,
                    preferred_element_type=jnp.float32)
        energy = e.reshape(TB, T, H)
    else:
        # TODO(synk): T not sublane-aligned; pad T to a multiple of 8 upstream
        # to hit the single-matmul fast path.
        energy = jnp.stack(
            [jnp.dot(enc[i], wte, preferred_element_type=jnp.float32)
             for i in range(TB)], axis=0)

    energy = jnp.maximum(energy + hid_bias[:, None, :], 0.0)   # (TB, T, H), ReLU

    # scores[b, t] = v . energy[b, t, :]  — VPU mul + lane reduce, no transpose.
    scores = jnp.sum(energy * v[None, :, :], axis=-1)          # (TB, T)

    # Softmax over time (lane axis); divide via the EUP approximate reciprocal.
    m = jnp.max(scores, axis=-1, keepdims=True)
    p = jnp.exp(scores - m)
    denom = jnp.sum(p, axis=-1, keepdims=True)
    out_ref[...] = p * pl.reciprocal(denom, approx=True)


def _pick_batch_block(B, T, H, itemsize, budget_bytes=16 << 20):
    """Pick the batch tile TB: a multiple of 8 dividing B whose double-buffered
    encoder block fits the VMEM budget, preferring an even grid (v7x: 2 TCs);
    else fall back to the whole batch in one step."""
    candidates = [tb for tb in (64, 32, 16, 8)
                  if B % tb == 0 and 2 * tb * T * H * itemsize <= budget_bytes]
    for tb in candidates:
        if (B // tb) % 2 == 0:      # even grid -> both v7x TensorCores busy
            return tb
    return candidates[0] if candidates else B


def attention_forward(hidden, encoder_outputs, w, b, v, *,
                      seq_major=True, compute_dtype=jnp.float32):
    """hidden: [B, H]; encoder_outputs: [T, B, H] (module layout) if seq_major,
    else already batch-major [B, T, H]; w: [H, 2H]; b: [H]; v: [H].
    Returns softmax attention weights of shape [B, 1, T]."""
    if seq_major:
        # Producers that can emit batch-major [B, T, H] should pass
        # seq_major=False to skip this extra HBM round trip.
        enc_bth = jnp.transpose(encoder_outputs, (1, 0, 2))     # [B, T, H]
    else:
        enc_bth = encoder_outputs
    B, T, H = enc_bth.shape

    # Split Linear: x @ W.T == hidden @ W[:, :H].T + enc @ W[:, H:].T
    wth = w[:, :H].T.astype(compute_dtype)                      # (H, H)
    wte = w[:, H:].T.astype(compute_dtype)                      # (H, H)
    b2 = b.reshape(1, H).astype(jnp.float32)
    v2 = v.reshape(1, H).astype(jnp.float32)
    hid = hidden.astype(compute_dtype)
    enc = enc_bth.astype(compute_dtype)

    TB = _pick_batch_block(B, T, H, jnp.dtype(compute_dtype).itemsize)
    assert B % TB == 0

    grid_spec = pltpu.PrefetchScalarGridSpec(
        num_scalar_prefetch=0,
        grid=(B // TB,),
        in_specs=[
            pl.BlockSpec((TB, H), lambda i: (i, 0)),            # hidden
            pl.BlockSpec((TB, T, H), lambda i: (i, 0, 0)),      # encoder outputs
            pl.BlockSpec((H, H), lambda i: (0, 0)),             # Wth (resident)
            pl.BlockSpec((H, H), lambda i: (0, 0)),             # Wte (resident)
            pl.BlockSpec((1, H), lambda i: (0, 0)),             # bias
            pl.BlockSpec((1, H), lambda i: (0, 0)),             # v
        ],
        out_specs=pl.BlockSpec((TB, T), lambda i: (i, 0)),      # lane-dense [B, T]
    )

    out_bt = pl.pallas_call(
        _attention_kernel,
        out_shape=jax.ShapeDtypeStruct((B, T), jnp.float32),
        grid_spec=grid_spec,
        compiler_params=pltpu.CompilerParams(
            dimension_semantics=("parallel",),
            vmem_limit_bytes=32 * 1024 * 1024),
    )(hid, enc, wth, wte, b2, v2)

    return out_bt[:, None, :]                                   # [B, 1, T]


def attention_reference(hidden, encoder_outputs, w, b, v):
    """Pure-JAX reference mirroring the PyTorch module exactly."""
    T, B, H = encoder_outputs.shape
    h = jnp.broadcast_to(hidden[None], (T, B, H)).transpose(1, 0, 2)   # [B,T,H]
    enc = encoder_outputs.transpose(1, 0, 2)                           # [B,T,H]
    x = jnp.concatenate([h, enc], axis=2)                              # [B,T,2H]
    energy = jax.nn.relu(jnp.einsum("bti,hi->bth", x, w) + b)          # [B,T,H]
    scores = jnp.einsum("h,bth->bt", v, energy)                        # [B,T]
    return jax.nn.softmax(scores, axis=1)[:, None, :]                  # [B,1,T]


if __name__ == "__main__":
    B, T, H = 2, 8, 32

    key = jax.random.PRNGKey(0)
    k_hid, k_enc, k_w, k_b, k_v = jax.random.split(key, 5)

    # Deterministic parameter init (shapes from nn.Linear(2H, H) and v: [H]).
    stdv_lin = 1.0 / math.sqrt(2 * H)
    w = jax.random.uniform(k_w, (H, 2 * H), jnp.float32, -stdv_lin, stdv_lin)
    b = jax.random.uniform(k_b, (H,), jnp.float32, -stdv_lin, stdv_lin)
    stdv_v = 1.0 / math.sqrt(H)
    v = jax.random.uniform(k_v, (H,), jnp.float32, -stdv_v, stdv_v)

    # Example inputs (module layout: encoder_outputs is seq-first [T, B, H]).
    hidden = jax.random.normal(k_hid, (B, H), jnp.float32)
    encoder_outputs = jax.random.normal(k_enc, (T, B, H), jnp.float32)

    out = attention_forward(hidden, encoder_outputs, w, b, v)
    out = jax.block_until_ready(out)

    ref = attention_reference(hidden, encoder_outputs, w, b, v)
    # Tolerance slightly looser than 1e-5 only because the softmax denominator
    # uses the EUP approximate reciprocal (pl.reciprocal(approx=True)).
    np.testing.assert_allclose(np.asarray(out), np.asarray(ref),
                               rtol=5e-3, atol=5e-4)
    assert out.shape == (B, 1, T)
    print("KERNEL_OK")
</pallas_src>

<mosaic_0001>
module attributes {stable_mosaic.version = 11 : i64} {
  func.func @_attention_kernel(%arg0: i32, %arg1: memref<2x32xf32, #tpu.memory_space<vmem>>, %arg2: memref<2x8x32xf32, #tpu.memory_space<vmem>>, %arg3: memref<32x32xf32, #tpu.memory_space<vmem>>, %arg4: memref<32x32xf32, #tpu.memory_space<vmem>>, %arg5: memref<1x32xf32, #tpu.memory_space<vmem>>, %arg6: memref<1x32xf32, #tpu.memory_space<vmem>>, %arg7: memref<2x8xf32, #tpu.memory_space<vmem>>) attributes {dimension_semantics = [#tpu.dimension_semantics<parallel>], iteration_bounds = array<i64: 1>, scalar_prefetch = 0 : i64, scratch_operands = 0 : i64, tpu.core_type = #tpu.core_type<tc>, window_params = [{transform_indices = @transform_0, window_bounds = array<i64: 2, 32>}, {transform_indices = @transform_1, window_bounds = array<i64: 2, 8, 32>}, {pipeline_mode = #tpu.pipeline_mode<synchronous>, transform_indices = @transform_2, window_bounds = array<i64: 32, 32>}, {pipeline_mode = #tpu.pipeline_mode<synchronous>, transform_indices = @transform_3, window_bounds = array<i64: 32, 32>}, {pipeline_mode = #tpu.pipeline_mode<synchronous>, transform_indices = @transform_4, window_bounds = array<i64: 1, 32>}, {pipeline_mode = #tpu.pipeline_mode<synchronous>, transform_indices = @transform_5, window_bounds = array<i64: 1, 32>}, {transform_indices = @transform_6, window_bounds = array<i64: 2, 8>}]} {
    %c0 = arith.constant 0 : index
    %c0_0 = arith.constant 0 : index
    %0 = vector.load %arg4[%c0, %c0_0] : memref<32x32xf32, #tpu.memory_space<vmem>>, vector<32x32xf32>
    %c0_1 = arith.constant 0 : index
    %c0_2 = arith.constant 0 : index
    %1 = vector.load %arg6[%c0_1, %c0_2] : memref<1x32xf32, #tpu.memory_space<vmem>>, vector<1x32xf32>
    %c0_3 = arith.constant 0 : index
    %c0_4 = arith.constant 0 : index
    %2 = vector.load %arg1[%c0_3, %c0_4] : memref<2x32xf32, #tpu.memory_space<vmem>>, vector<2x32xf32>
    %c0_5 = arith.constant 0 : index
    %c0_6 = arith.constant 0 : index
    %3 = vector.load %arg3[%c0_5, %c0_6] : memref<32x32xf32, #tpu.memory_space<vmem>>, vector<32x32xf32>
    %cst = arith.constant dense<0.000000e+00> : vector<2x32xf32>
    %4 = tpu.matmul %2, %3, %cst {dimension_numbers = #tpu.dot_dimension_numbers<[1], [0], [0], [1], [0, 0, 1, 1], [], []>} : vector<2x32xf32>, vector<32x32xf32>, vector<2x32xf32> -> vector<2x32xf32>
    %c0_7 = arith.constant 0 : index
    %c0_8 = arith.constant 0 : index
    %5 = vector.load %arg5[%c0_7, %c0_8] : memref<1x32xf32, #tpu.memory_space<vmem>>, vector<1x32xf32>
    %6 = vector.broadcast %5 : vector<1x32xf32> to vector<2x32xf32>
    %7 = arith.addf %4, %6 : vector<2x32xf32>
    %c0_9 = arith.constant 0 : index
    %c0_10 = arith.constant 0 : index
    %c0_11 = arith.constant 0 : index
    %8 = vector.load %arg2[%c0_9, %c0_10, %c0_11] : memref<2x8x32xf32, #tpu.memory_space<vmem>>, vector<2x8x32xf32>
    %9 = vector.shape_cast %8 : vector<2x8x32xf32> to vector<16x32xf32>
    %cst_12 = arith.constant dense<0.000000e+00> : vector<16x32xf32>
    %10 = tpu.matmul %9, %0, %cst_12 {dimension_numbers = #tpu.dot_dimension_numbers<[1], [0], [0], [1], [0, 0, 1, 1], [], []>} : vector<16x32xf32>, vector<32x32xf32>, vector<16x32xf32> -> vector<16x32xf32>
    %11 = vector.shape_cast %10 : vector<16x32xf32> to vector<2x8x32xf32>
    %12 = vector.shape_cast %7 : vector<2x32xf32> to vector<2x1x32xf32>
    %13 = vector.broadcast %12 : vector<2x1x32xf32> to vector<2x8x32xf32>
    %14 = arith.addf %11, %13 : vector<2x8x32xf32>
    %cst_13 = arith.constant 0.000000e+00 : f32
    %15 = vector.broadcast %cst_13 : f32 to vector<2x8x32xf32>
    %16 = arith.maximumf %14, %15 : vector<2x8x32xf32>
    %17 = vector.shape_cast %1 : vector<1x32xf32> to vector<1x1x32xf32>
    %18 = vector.broadcast %17 : vector<1x1x32xf32> to vector<2x8x32xf32>
    %19 = arith.mulf %16, %18 : vector<2x8x32xf32>
    %cst_14 = arith.constant dense<0.000000e+00> : vector<2x8xf32>
    %20 = vector.multi_reduction <add>, %19, %cst_14 [2] : vector<2x8x32xf32> to vector<2x8xf32>
    %cst_15 = arith.constant dense<0xFF800000> : vector<2xf32>
    %21 = vector.multi_reduction <maximumf>, %20, %cst_15 [1] : vector<2x8xf32> to vector<2xf32>
    %22 = vector.shape_cast %21 : vector<2xf32> to vector<2x1xf32>
    %23 = vector.broadcast %22 : vector<2x1xf32> to vector<2x8xf32>
    %24 = arith.subf %20, %23 : vector<2x8xf32>
    %25 = math.exp %24 : vector<2x8xf32>
    %cst_16 = arith.constant dense<0.000000e+00> : vector<2xf32>
    %26 = vector.multi_reduction <add>, %25, %cst_16 [1] : vector<2x8xf32> to vector<2xf32>
    %27 = vector.shape_cast %26 : vector<2xf32> to vector<2x1xf32>
    %28 = tpu.reciprocal %27 {approx = true} : vector<2x1xf32> -> vector<2x1xf32>
    %29 = vector.broadcast %28 : vector<2x1xf32> to vector<2x8xf32>
    %30 = arith.mulf %25, %29 : vector<2x8xf32>
    %c0_17 = arith.constant 0 : index
    %c0_18 = arith.constant 0 : index
    %31 = vector.load %arg7[%c0_17, %c0_18] : memref<2x8xf32, #tpu.memory_space<vmem>>, vector<2x8xf32>
    tpu.vector_store %arg7[%c0_17, %c0_18], %30 {strides = array<i32>} : memref<2x8xf32, #tpu.memory_space<vmem>>, vector<2x8xf32>,
    return
  }
  func.func @transform_0(%arg0: i32) -> (i32, i32) {
    %c0_i32 = arith.constant 0 : i32
    %c0_i32_0 = arith.constant 0 : i32
    return %arg0, %c0_i32 : i32, i32
  }
  func.func @transform_1(%arg0: i32) -> (i32, i32, i32) {
    %c0_i32 = arith.constant 0 : i32
    %c0_i32_0 = arith.constant 0 : i32
    %c0_i32_1 = arith.constant 0 : i32
    return %arg0, %c0_i32, %c0_i32_0 : i32, i32, i32
  }
  func.func @transform_2(%arg0: i32) -> (i32, i32) {
    %c0_i32 = arith.constant 0 : i32
    %c0_i32_0 = arith.constant 0 : i32
    %c0_i32_1 = arith.constant 0 : i32
    return %c0_i32, %c0_i32_0 : i32, i32
  }
  func.func @transform_3(%arg0: i32) -> (i32, i32) {
    %c0_i32 = arith.constant 0 : i32
    %c0_i32_0 = arith.constant 0 : i32
    %c0_i32_1 = arith.constant 0 : i32
    return %c0_i32, %c0_i32_0 : i32, i32
  }
  func.func @transform_4(%arg0: i32) -> (i32, i32) {
    %c0_i32 = arith.constant 0 : i32
    %c0_i32_0 = arith.constant 0 : i32
    %c0_i32_1 = arith.constant 0 : i32
    return %c0_i32, %c0_i32_0 : i32, i32
  }
  func.func @transform_5(%arg0: i32) -> (i32, i32) {
    %c0_i32 = arith.constant 0 : i32
    %c0_i32_0 = arith.constant 0 : i32
    %c0_i32_1 = arith.constant 0 : i32
    return %c0_i32, %c0_i32_0 : i32, i32
  }
  func.func @transform_6(%arg0: i32) -> (i32, i32) {
    %c0_i32 = arith.constant 0 : i32
    %c0_i32_0 = arith.constant 0 : i32
    return %arg0, %c0_i32 : i32, i32
  }
}

</mosaic_0001>

<bundles_post_ra>
// kernel: tpu_custom_call.1
= control target key start
LH: loop header
LB: loop body
LE: loop exit
PB: predicated region body
PF: predicated region fallthrough
CT: control target
= control target key end

     0   :  { %11 = vsyncpa [#allocation3], 0  ;;  %s483_s0 = inlined_call_operand.hbm [shape: f32[2,32], index: 0, kind: input, shape index: {}]   ;;  %s484_s1 = inlined_call_operand.hbm [shape: f32[2,8,32], index: 1, kind: input, shape index: {}]   ;;  %s485_s2 = inlined_call_operand.hbm [shape: f32[32,32], index: 2, kind: input, shape index: {}]   ;;  %s486_s3 = inlined_call_operand.hbm [shape: f32[32,32], index: 3, kind: input, shape index: {}]   ;;  %s487_s4 = inlined_call_operand.vmem [shape: f32[1,32], index: 4, kind: input, shape index: {}]   ;;  %s488_s5 = inlined_call_operand.vmem [shape: f32[1,32], index: 5, kind: input, shape index: {}]   ;;  %s489_s6 = inlined_call_operand.hbm [shape: f32[2,8], index: 6, kind: output, shape index: {}]  }
   0x1   :  { %12 = vsyncpa [#allocation6], 0 }
   0x2   :  { %13 = vsyncpa [#allocation9], 0  ;;  %s30_s23 = sshll.u32 %s484_s1, 4  ;;  %s31_s23 = int_to_ptr.hbm [resolvable:$true] %s30_s23 }
   0x3   :  { %14 = vsyncpa [#allocation4], 0  ;;  %s408_s24 = smov [#allocation5]   ;;  %s20_s28 = sshll.u32 %s483_s0, 4  ;;  %s21_s28 = int_to_ptr.hbm [resolvable:$true] %s20_s28 }
   0x4   :  { %s32_s25 = sshll.u32 %s408_s24, 4  ;;  %s409_s29 = smov 128   ;;  %s33_s25 = int_to_ptr.vmem [resolvable:$true] %s32_s25 }
   0x5   :  { %s410_s30 = smov 8   ;;  %s411_s7 = smov [#allocation2]  }
   0x6   :  { %38 = dma.hbm_to_vmem [thread:$0]  %s31_s23, 256, %s33_s25, [#allocation6], %s409_s29, %s409_s29, %s410_s30  }
   0x7   :  { %s22_s8 = sshll.u32 %s411_s7, 4  ;;  %s43_s11 = sshll.u32 %s485_s2, 4  ;;  %s23_s8 = int_to_ptr.vmem [resolvable:$true] %s22_s8  ;;  %s44_s11 = int_to_ptr.hbm [resolvable:$true] %s43_s11 }
   0x8   :  { %25 = dma.hbm_to_vmem [thread:$0]  %s21_s28, 32, %s23_s8, [#allocation3]  }
   0x9   :  { %s56_s13 = sshll.u32 %s486_s3, 4  ;;  %s412_s14 = smov [#allocation7]   ;;  %s57_s13 = int_to_ptr.hbm [resolvable:$true] %s56_s13 }
   0xa   :  { %s45_s15 = sshll.u32 %s412_s14, 4  ;;  %s413_s0 = smov [#allocation8]   ;;  %s46_s15 = int_to_ptr.vmem [resolvable:$true] %s45_s15 }
   0xb   :  { %51 = dma.hbm_to_vmem [thread:$0]  %s44_s11, 512, %s46_s15, [#allocation6], %s409_s29, %s409_s29, %s410_s30  }
   0xc   :  { %s58_s16 = sshll.u32 %s413_s0, 4  ;;  %s59_s16 = int_to_ptr.vmem [resolvable:$true] %s58_s16 }
   0xd   :  { %64 = dma.hbm_to_vmem [thread:$0]  %s57_s13, 512, %s59_s16, [#allocation9], %s409_s29, %s409_s29, %s410_s30  }
   0xe   :  { %400 = dma.done.wait [#allocation3], 32  }
   0xf   :  { %401 = vsyncadd [#allocation3], 4294967264 }
  0x10   :  { %402 = dma.done.wait [#allocation6], 768  }
  0x11   :  { %403 = vsyncadd [#allocation6], 4294966528 }
  0x12   :  { %404 = dma.done.wait [#allocation9], 512  }
  0x13   :  { %405 = vsyncadd [#allocation9], 4294966784  ;;  %v94_v0 = vld [vmem:[#allocation7 + $0x18] sm:$0xff]  ;;  %v93_v2 = vld [vmem:[#allocation7 + $0x10] sm:$0xff]  ;;  %vm99_vm0 = vcmask 261120   ;;  %v177_v29 = vlaneseq  ;;  %vm181_vm1 = vcmask 1041409  }
  0x14   :  { %v88_v1 = vld [vmem:[#allocation8 + $0x18] sm:$0xff]  ;;  %115 = vmatpush.msra.mxu0 %v94_v0  ;;  %v87_v3 = vld [vmem:[#allocation8 + $0x10] sm:$0xff]  ;;  %v92_v4 = vld [vmem:[#allocation7 + $0x8] sm:$0xff]  ;;  %vm184_vm2 = vcmask 58368   ;;  %v414_v36 = vmov 0   ;;  %s242_s21 = sshll.u32 %s489_s6, 4  ;;  %s243_s21 = int_to_ptr.hbm [resolvable:$true] %s242_s21 }
  0x15   :  { %257 = vmatpush.msra.mxu2 %v88_v1  ;;  %143 = vmatpush.msra.mxu1 %v88_v1  ;;  %v86_v5 = vld [vmem:[#allocation8 + $0x8] sm:$0xff]  ;;  %v91_v6 = vld [vmem:[#allocation7] sm:$0xff]  ;;  %v124_v9 = vld [vmem:[#allocation5 + $0x8] sm:$0xff]  ;;  %v178_v30 = vand.u32 127, %v177_v29 }
  0x16   :  { %116 = vmatpush.msra.mxu0 %v93_v2  ;;  %v85_v7 = vld [vmem:[#allocation8] sm:$0xff]  ;;  %v90_v8 = vld [vmem:[#allocation2] sm:$0x3]  ;;  %v123_v10 = vld [vmem:[#allocation5] sm:$0xff]  ;;  %270 = vset.pattern.permute.xlu2 %v414_v36 }
  0x17   :  { %258 = vmatpush.msra.mxu2 %v87_v3  ;;  %144 = vmatpush.msra.mxu1 %v87_v3  ;;  %v272_v11 = vld [vmem:[%s487_s4] ss:$0 sm:$0xff]  ;;  %s415_s4 = smov [#allocation10]  }
  0x18   :  { %117 = vmatpush.msra.mxu0 %v92_v4  ;;  %v273_v19 = vld [vmem:[%s488_s5] ss:$0 sm:$0xff]  ;;  %269 = vset.pattern.permute.xlu1 %v414_v36  ;;  %s240_s5 = sshll.u32 %s415_s4, 4  ;;  %s241_s5 = int_to_ptr.vmem [resolvable:$true] %s240_s5 }
  0x19   :  { %259 = vmatpush.msra.mxu2 %v86_v5  ;;  %145 = vmatpush.msra.mxu1 %v86_v5 }
  0x1a   :  { %118 = vmatpush.msra.mxu0 %v91_v6  ;;  %271 = vset.pattern.permute.xlu0 %v414_v36 }
  0x1b   :  { %260 = vmatpush.msra.mxu2 %v85_v7  ;;  %254 = vmatmul.msk.f32.vlgmr.msra.gmra.mxu0 %vm99_vm0, %v90_v8 }
  0x1c   :  { %256 = vmatmul.msk.f32.vlgmr.msra.gmra.mxu2 %vm99_vm0, %v124_v9  ;;  %146 = vmatpush.msra.mxu1 %v85_v7 }
  0x1d   :  { %255 = vmatmul.msk.f32.vlgmr.msra.gmra.mxu1 %vm99_vm0, %v123_v10 }
  0x98   :  { %v120_v12 = vpop.f32.mrf.mxu0 }
  0x99   :  { %v121_v13 = vadd.f32 %v272_v11, %v120_v12 }
  0x9a   :  { %v148_v14 = vpop.f32.mrf.mxu1 }
  0x9b   :  { %v155_v15 = vrot.slane %v121_v13, 1  ;;  %v156_v16 = vperm.slane %v121_v13, 0 }
  0x9d   :  { %v160_v17 = vadd.f32 %v156_v16, %v148_v14  ;;  %v157_v18 = vperm.slane %v155_v15, 0 }
  0x9f   :  { %v151_v20 = vpop.f32.mrf.mxu2  ;;  %v162_v21 = vmax.f32 %v160_v17, 0.0 }
  0xa0   :  { %v161_v22 = vadd.f32 %v157_v18, %v151_v20 }
  0xa1   :  { %v167_v23 = vmul.f32 %v273_v19, %v162_v21 }
  0xa2   :  { %v163_v24 = vmax.f32 %v161_v22, 0.0 }
  0xa3   :  { %v169_v25 = vsel %vm99_vm0, %v167_v23, 0.0 }
  0xa4   :  { %170 = vadd.xlane.f32.xlu0 %v169_v25  ;;  %v168_v26 = vmul.f32 %v273_v19, %v163_v24 }
  0xa6   :  { %v172_v27 = vsel %vm99_vm0, %v168_v26, 0.0 }
  0xac   :  { %173 = vadd.xlane.f32.xlu0 %v172_v27 }
 0x117   :  { %v171_v28 = vpop.xlane.xlu0 %170 }
 0x118   :  { %v179_v32 = vperm.slane %v171_v28, %v178_v30 }
 0x11f   :  { %v174_v31 = vpop.xlane.xlu0 %173 }
 0x120   :  { %v180_v33 = vperm.slane %v174_v31, %v178_v30 }
 0x122   :  { %v182_v34 = vsel %vm181_vm1, %v180_v33, %v179_v32 }
 0x123   :  { %v185_v35 = vsel %vm184_vm2, %v182_v34, -inf }
 0x124   :  { %186 = vmax.xlane.f32.xlu1 %v185_v35 }
 0x197   :  { %v187_v37 = vpop.xlane.xlu1 %186 }
 0x198   :  { %v189_v38 = vperm.slane %v187_v37, 0  ;;  %v190_v39 = vperm.slane %v187_v37, 1 }
 0x19a   :  { %v193_v40 = vsub.f32 %v171_v28, %v189_v38  ;;  %v194_v41 = vsub.f32 %v174_v31, %v190_v39 }
 0x19c   :  { %v195_v42 = vmul.f32 1.442695, %v193_v40  ;;  %v197_v43 = vmul.f32 1.442695, %v194_v41 }
 0x19e   :  { %274 = vpow2.f32 %v195_v42 }
 0x19f   :  { %276 = vpow2.f32 %v197_v43 }
 0x1a4   :  { %v275_v44 = vpop.eup %274 }
 0x1a5   :  { %v277_v45 = vpop.eup %276  ;;  %202 = vperm.xlu1 %269, %v275_v44  }
 0x1a6   :  { %205 = vperm.xlu2 %270, %v277_v45  }
 0x200   :  { %v206_v46 = vpop.permute.xlu2 %205 }
 0x201   :  { %v208_v48 = vperm.slane %v206_v46, %v178_v30 }
 0x217   :  { %v203_v47 = vpop.permute.xlu1 %202 }
 0x218   :  { %v207_v49 = vperm.slane %v203_v47, %v178_v30 }
 0x21a   :  { %v209_v50 = vsel %vm181_vm1, %v208_v48, %v207_v49 }
 0x21b   :  { %v211_v51 = vsel %vm184_vm2, %v209_v50, 0.0 }
 0x21c   :  { %212 = vadd.xlane.f32.xlu2 %v211_v51 }
 0x28f   :  { %v213_v52 = vpop.xlane.xlu2 %212 }
 0x290   :  { %278 = vrcp.f32 %v213_v52 }
 0x296   :  { %v279_v53 = vpop.eup %278 }
 0x297   :  { %v217_v54 = vperm.slane %v279_v53, 1  ;;  %v216_v55 = vperm.slane %v279_v53, 0 }
 0x299   :  { %v221_v56 = vmul.f32 %v277_v45, %v217_v54  ;;  %v220_v57 = vmul.f32 %v275_v44, %v216_v55 }
 0x29b   :  { %228 = vperm.xlu1 %269, %v221_v56   ;;  %225 = vperm.xlu0 %271, %v220_v57  }
 0x30d   :  { %v229_v58 = vpop.permute.xlu1 %228  ;;  %v226_v59 = vpop.permute.xlu0 %225 }
 0x30e   :  { %v231_v60 = vperm.slane %v229_v58, %v178_v30  ;;  %v230_v61 = vperm.slane %v226_v59, %v178_v30 }
 0x310   :  { %v232_v62 = vsel %vm181_vm1, %v231_v60, %v230_v61 }
 0x311   :  { %234 = vst.msk [vmem:[#allocation10] sm:$0x3] %vm184_vm2, %v232_v62 }
 0x312   :  { %245 = dma.vmem_to_hbm [thread:$0]  %s241_s5, 32, %s243_s21, [#allocation4]  }
 0x313   :  { %406 = dma.done.wait [#allocation4], 32  }
 0x314   :  { %407 = vsyncadd [#allocation4], 4294967264 }
 0x315   :  { %250 = vsyncpa [#allocation3], 1 }
 0x316   :  { %251 = vsyncpa [#allocation6], 1 }
 0x317   :  { %252 = vsyncpa [#allocation9], 1 }
 0x318   :  { %253 = vsyncpa [#allocation4], 1 }

</bundles_post_ra>
